<compile_context>
chip_gen: v7x
topology: tpu7x:2x2x1
jax: 0.10.0
libtpu: 0.0.40
codegen_flags: <defaults>
</compile_context>

<pallas_src>
import functools

import jax
import jax.numpy as jnp
from jax import lax
from jax.experimental import pallas as pl
from jax.experimental.pallas import tpu as pltpu


def _vmem_budget_bytes():
    """Generation-aware VMEM budget (~half the per-core capacity)."""
    cap = 64 * 1024 * 1024            # conservative default: v7x per-TC VMEM
    try:
        info = pltpu.get_tpu_info()
        cap = int(getattr(info, "vmem_capacity_bytes", cap))
    except Exception:
        pass
    return max(cap // 2, 16 * 1024 * 1024)   # ~32 MiB v7x, ~64 MiB v5e/v6e


# ---------------------------------------------------------------------------
# Kernels
# ---------------------------------------------------------------------------


def _gram_rows_single_kernel(y_ref, g_ref, *, multi_label):
    """B <= C, whole [B, C] slab in one block: fused softmax/sigmoid + P P^T."""
    y = y_ref[...].astype(jnp.float32)
    if multi_label:
        p = jax.nn.sigmoid(y)
    else:
        m = jnp.max(y, axis=1, keepdims=True)
        e = jnp.exp(y - m)
        p = e / jnp.sum(e, axis=1, keepdims=True)
    g_ref[...] = lax.dot_general(            # P @ P^T (NT, transpose-free)
        p, p, dimension_numbers=(((1,), (1,)), ((), ())),
        preferred_element_type=jnp.float32)


def _gram_rows_stream_kernel(y_ref, g_ref, l_ref, m_ref, *, multi_label,
                             num_cols, tile_c, ragged):
    """B <= C: stream class-axis tiles, single-pass online-softmax Gram.

    Accumulates G = E @ E^T with E = exp(y - running_row_max) plus row sums l;
    whenever the running max grows, both are rescaled in place (flash-style),
    so y_t is read from HBM exactly once.  multi_label (sigmoid) needs no
    cross-tile statistics and just accumulates P @ P^T.
    """
    t = pl.program_id(0)

    @pl.when(t == 0)
    def _init():
        g_ref[...] = jnp.zeros_like(g_ref)
        l_ref[...] = jnp.zeros_like(l_ref)
        m_ref[...] = jnp.full_like(m_ref, -jnp.inf)

    # Cast AFTER the DMA: input streams in its native dtype.
    y = y_ref[...].astype(jnp.float32)                 # [B, tile_c]

    if multi_label:
        p = jax.nn.sigmoid(y)
        if ragged:                                     # mask padded lanes
            col = t * tile_c + lax.broadcasted_iota(jnp.int32, p.shape, 1)
            p = jnp.where(col < num_cols, p, 0.0)
        g_ref[...] += lax.dot_general(
            p, p, dimension_numbers=(((1,), (1,)), ((), ())),
            preferred_element_type=jnp.float32)
        return

    if ragged:                                         # mask padded lanes
        col = t * tile_c + lax.broadcasted_iota(jnp.int32, y.shape, 1)
        y = jnp.where(col < num_cols, y, -jnp.inf)

    m_old = m_ref[...]                                 # [B, 1]
    m_new = jnp.maximum(m_old, jnp.max(y, axis=1, keepdims=True))
    alpha = jnp.exp(m_old - m_new)                     # [B, 1], in (0, 1]
    e = jnp.exp(y - m_new)                             # [B, tile_c]

    # outer(alpha, alpha) rescale of the resident Gram, built as a tiny MXU
    # matmul on a lane-broadcast alpha (K = 128) -- stays on the proven
    # dot_general lowering path (no in-kernel transpose); exactly 1.0 when the
    # running max did not change, so there is no drift in the common case.
    a_b = jnp.broadcast_to(alpha, (alpha.shape[0], 128))
    axa = lax.dot_general(
        a_b, a_b, dimension_numbers=(((1,), (1,)), ((), ())),
        preferred_element_type=jnp.float32) * (1.0 / 128.0)

    l_ref[...] = alpha * l_ref[...] + jnp.sum(e, axis=1, keepdims=True)
    g_ref[...] = axa * g_ref[...] + lax.dot_general(   # E @ E^T (NT)
        e, e, dimension_numbers=(((1,), (1,)), ((), ())),
        preferred_element_type=jnp.float32)
    m_ref[...] = m_new


def _gram_cols_kernel(y_ref, g_ref, *, multi_label, tile_b, batch, ragged):
    """C < B: stream batch-axis tiles; row-local softmax/sigmoid, G = P^T P."""
    i = pl.program_id(0)

    @pl.when(i == 0)
    def _init():
        g_ref[...] = jnp.zeros_like(g_ref)

    y = y_ref[...].astype(jnp.float32)                 # [tile_b, C]

    if multi_label:
        p = jax.nn.sigmoid(y)
    else:
        m = jnp.max(y, axis=1, keepdims=True)
        e = jnp.exp(y - m)
        denom = jnp.sum(e, axis=1, keepdims=True)
        r = pl.reciprocal(denom, approx=True)          # EUP slot (free-ish)
        r = r * (2.0 - denom * r)                      # one Newton step
        p = e * r

    if ragged:                                         # zero padded batch rows
        row = i * tile_b + lax.broadcasted_iota(jnp.int32, p.shape, 0)
        p = jnp.where(row < batch, p, 0.0)

    g_ref[...] += lax.dot_general(                     # P^T @ P (TN)
        p, p, dimension_numbers=(((0,), (0,)), ((), ())),
        preferred_element_type=jnp.float32)


# ---------------------------------------------------------------------------
# Wrapper
# ---------------------------------------------------------------------------


def _gram_small_side(y_t, *, multi_label, max_block_elems=None):
    """k x k Gram matrix of P = softmax/sigmoid(y_t), with k = min(B, C)."""
    B, C = y_t.shape
    k = min(B, C)
    budget = _vmem_budget_bytes()

    # Resident k x k f32 accumulator (count a possible double buffer).
    acc_bytes = 2 * 4 * k * k
    if acc_bytes + (4 << 20) > budget:
        # TODO(synk): output-tiled (tm, tn) Gram / 2-TC split for huge k; the
        # plain-XLA fallback keeps large problems correct without VMEM OOM.
        y32 = y_t.astype(jnp.float32)
        p = jax.nn.sigmoid(y32) if multi_label else jax.nn.softmax(y32, axis=1)
        return p @ p.T if B <= C else p.T @ p

    # Auto-size the streaming block: multi-MiB blocks within the generation
    # VMEM budget (inputs are double buffered; the in-kernel f32 cast / exp
    # temporaries cost roughly a few block-sized f32 copies -> ~32 B/elem).
    avail = max(budget - acc_bytes - (4 << 20), 1 << 20)
    block_elems = max(avail // 32, 8 * 128)
    if max_block_elems is not None:
        block_elems = min(block_elems, max(int(max_block_elems), 1))
    params = pltpu.CompilerParams(dimension_semantics=("arbitrary",),
                                  vmem_limit_bytes=budget)

    if B <= C:
        # Stream over the class axis; Gram = P @ P^T -> [B, B].
        tile_c = max((block_elems // max(B, 1)) // 128 * 128, 128)
        if tile_c >= C:
            # Whole slab fits in one block: single grid step, one DMA.
            kernel = functools.partial(_gram_rows_single_kernel,
                                       multi_label=multi_label)
            return pl.pallas_call(
                kernel,
                out_shape=jax.ShapeDtypeStruct((B, B), jnp.float32),
                grid_spec=pltpu.PrefetchScalarGridSpec(
                    num_scalar_prefetch=0,
                    grid=(1,),
                    in_specs=[pl.BlockSpec((B, C), lambda t: (0, 0))],
                    out_specs=pl.BlockSpec((B, B), lambda t: (0, 0))),
                compiler_params=params,
            )(y_t)

        n_tiles = -(-C // tile_c)
        kernel = functools.partial(_gram_rows_stream_kernel,
                                   multi_label=multi_label, num_cols=C,
                                   tile_c=tile_c, ragged=(C % tile_c != 0))
        gram, l = pl.pallas_call(
            kernel,
            out_shape=(jax.ShapeDtypeStruct((B, B), jnp.float32),
                       jax.ShapeDtypeStruct((B, 1), jnp.float32)),
            grid_spec=pltpu.PrefetchScalarGridSpec(
                num_scalar_prefetch=0,
                grid=(n_tiles,),
                in_specs=[pl.BlockSpec((B, tile_c), lambda t: (0, t))],
                out_specs=(pl.BlockSpec((B, B), lambda t: (0, 0)),
                           pl.BlockSpec((B, 1), lambda t: (0, 0))),
                scratch_shapes=[pltpu.VMEM((B, 1), jnp.float32)]),
            compiler_params=params,
        )(y_t)
        if multi_label:
            return gram
        inv_l = 1.0 / l                                # exact, tiny [B, 1]
        return gram * (inv_l * inv_l.T)                # diag(1/l) G diag(1/l)

    # C < B: stream over the batch axis; softmax is row-local per tile.
    tile_b = max((block_elems // max(C, 1)) // 8 * 8, 8)
    if tile_b >= B:
        tile_b, n_tiles, ragged = B, 1, False
    else:
        n_tiles = -(-B // tile_b)
        ragged = (B % tile_b != 0)
    kernel = functools.partial(_gram_cols_kernel, multi_label=multi_label,
                               tile_b=tile_b, batch=B, ragged=ragged)
    return pl.pallas_call(
        kernel,
        out_shape=jax.ShapeDtypeStruct((C, C), jnp.float32),
        grid_spec=pltpu.PrefetchScalarGridSpec(
            num_scalar_prefetch=0,
            grid=(n_tiles,),
            in_specs=[pl.BlockSpec((tile_b, C), lambda i: (i, 0))],
            out_specs=pl.BlockSpec((C, C), lambda i: (0, 0))),
        compiler_params=params,
    )(y_t)


def bnm_forward(y_s, y_s_adv, y_t, y_t_adv, *, multi_label=False,
                max_block_elems=None):
    """Pallas-backed BatchNuclearnormMaximization.forward.

    y_s, y_s_adv, y_t_adv are accepted (matching the PyTorch signature) but,
    exactly as in the reference module, only y_t participates in the output.
    """
    del y_s, y_s_adv, y_t_adv
    gram = _gram_small_side(y_t, multi_label=multi_label,
                            max_block_elems=max_block_elems)
    # Singular values of P = sqrt of the eigenvalues of the small-side Gram;
    # the tiny k x k symmetric eigen-solve stays in plain JAX.
    evals = jnp.linalg.eigvalsh(gram)
    sing = jnp.sqrt(jnp.maximum(evals, 0.0))
    return jnp.mean(sing)


if __name__ == "__main__":
    def reference(y_t, multi_label):
        p = jax.nn.sigmoid(y_t) if multi_label else jax.nn.softmax(y_t, axis=1)
        return jnp.mean(jnp.linalg.svd(p.astype(jnp.float32),
                                       compute_uv=False))

    def run_case(idx, B, C, multi_label, max_block_elems=None):
        kcase = jax.random.fold_in(jax.random.PRNGKey(0), idx)
        k1, k2, k3, k4 = jax.random.split(kcase, 4)
        y_s = jax.random.normal(k1, (B, C), jnp.float32)
        y_s_adv = jax.random.normal(k2, (B, C), jnp.float32)
        y_t = jax.random.normal(k3, (B, C), jnp.float32)
        y_t_adv = jax.random.normal(k4, (B, C), jnp.float32)
        out = bnm_forward(y_s, y_s_adv, y_t, y_t_adv, multi_label=multi_label,
                          max_block_elems=max_block_elems)
        out = jax.block_until_ready(out)
        ref = reference(y_t, multi_label)
        assert jnp.allclose(out, ref, atol=1e-4, rtol=1e-4), (idx, out, ref)

    # Single-block rows path (whole [B, C] slab fits in one block).
    run_case(0, 8, 32, multi_label=False)
    run_case(1, 8, 32, multi_label=True)
    # Streaming rows path: online-softmax Gram over class tiles + ragged tile.
    run_case(2, 8, 400, multi_label=False, max_block_elems=8 * 128)
    run_case(3, 8, 400, multi_label=True, max_block_elems=8 * 128)
    # Cols path (C < B): batch-axis streaming + ragged last tile.
    run_case(4, 40, 16, multi_label=False, max_block_elems=16 * 16)
    run_case(5, 40, 16, multi_label=True, max_block_elems=16 * 16)

    print("KERNEL_OK")
</pallas_src>

<mosaic_0001>
module attributes {stable_mosaic.version = 11 : i64} {
  func.func @_gram_rows_single_kernel(%arg0: i32, %arg1: memref<8x32xf32, #tpu.memory_space<vmem>>, %arg2: memref<8x8xf32, #tpu.memory_space<vmem>>) attributes {dimension_semantics = [#tpu.dimension_semantics<arbitrary>], iteration_bounds = array<i64: 1>, scalar_prefetch = 0 : i64, scratch_operands = 0 : i64, tpu.core_type = #tpu.core_type<tc>, window_params = [{pipeline_mode = #tpu.pipeline_mode<synchronous>, transform_indices = @transform_0, window_bounds = array<i64: 8, 32>}, {pipeline_mode = #tpu.pipeline_mode<synchronous>, transform_indices = @transform_1, window_bounds = array<i64: 8, 8>}]} {
    %c0 = arith.constant 0 : index
    %c0_0 = arith.constant 0 : index
    %0 = vector.load %arg1[%c0, %c0_0] : memref<8x32xf32, #tpu.memory_space<vmem>>, vector<8x32xf32>
    %cst = arith.constant dense<0xFF800000> : vector<8xf32>
    %1 = vector.multi_reduction <maximumf>, %0, %cst [1] : vector<8x32xf32> to vector<8xf32>
    %2 = vector.shape_cast %1 : vector<8xf32> to vector<8x1xf32>
    %3 = vector.broadcast %2 : vector<8x1xf32> to vector<8x32xf32>
    %4 = arith.subf %0, %3 : vector<8x32xf32>
    %5 = math.exp %4 : vector<8x32xf32>
    %cst_1 = arith.constant dense<0.000000e+00> : vector<8xf32>
    %6 = vector.multi_reduction <add>, %5, %cst_1 [1] : vector<8x32xf32> to vector<8xf32>
    %7 = vector.shape_cast %6 : vector<8xf32> to vector<8x1xf32>
    %8 = vector.broadcast %7 : vector<8x1xf32> to vector<8x32xf32>
    %9 = arith.divf %5, %8 : vector<8x32xf32>
    %cst_2 = arith.constant dense<0.000000e+00> : vector<8x8xf32>
    %10 = tpu.matmul %9, %9, %cst_2 {dimension_numbers = #tpu.dot_dimension_numbers<[1], [1], [0], [0], [0, 0, 1, 0], [], []>} : vector<8x32xf32>, vector<8x32xf32>, vector<8x8xf32> -> vector<8x8xf32>
    %c0_3 = arith.constant 0 : index
    %c0_4 = arith.constant 0 : index
    %11 = vector.load %arg2[%c0_3, %c0_4] : memref<8x8xf32, #tpu.memory_space<vmem>>, vector<8x8xf32>
    tpu.vector_store %arg2[%c0_3, %c0_4], %10 {strides = array<i32>} : memref<8x8xf32, #tpu.memory_space<vmem>>, vector<8x8xf32>,
    return
  }
  func.func @transform_0(%arg0: i32) -> (i32, i32) {
    %c0_i32 = arith.constant 0 : i32
    %c0_i32_0 = arith.constant 0 : i32
    %c0_i32_1 = arith.constant 0 : i32
    return %c0_i32, %c0_i32_0 : i32, i32
  }
  func.func @transform_1(%arg0: i32) -> (i32, i32) {
    %c0_i32 = arith.constant 0 : i32
    %c0_i32_0 = arith.constant 0 : i32
    %c0_i32_1 = arith.constant 0 : i32
    return %c0_i32, %c0_i32_0 : i32, i32
  }
}

</mosaic_0001>

<bundles_post_ra>
// kernel: tpu_custom_call.1
= control target key start
LH: loop header
LB: loop body
LE: loop exit
PB: predicated region body
PF: predicated region fallthrough
CT: control target
= control target key end

     0   :  { %6 = vsyncpa [#allocation3], 0  ;;  %s231_s0 = inlined_call_operand.hbm [shape: f32[8,32], index: 0, kind: input, shape index: {}]   ;;  %s232_s1 = inlined_call_operand.hbm [shape: f32[8,8], index: 1, kind: output, shape index: {}]  }
   0x1   :  { %7 = vsyncpa [#allocation4], 0  ;;  %s189_s6 = smov [#allocation2]   ;;  %s141_s10 = scalar_lea.hbm %s231_s0, 128 }
   0x2   :  { %s14_s7 = sshll.u32 %s189_s6, 4  ;;  %p142_p0 = scmp.ne.s32.totalorder %s231_s0, %s141_s10  ;;  %s15_s7 = int_to_ptr.vmem [resolvable:$true] %s14_s7 }
   0x3   :  { %p145_p1 = scmp.lt.u32.totalorder %s141_s10, %s231_s0 }
   0x5   :  { %p147_p2 = pnand %p145_p1, %p142_p0 }
   0x7   :  { %150 = shalt.err (!%p147_p2)
}
   0x8   :  { %s151_s15 = scalar_lea.vmem %s15_s7, 128  ;;  %p156_p4 = scmp.lt.s32.totalorder %s15_s7, %s15_s7 }
   0x9   :  { %p152_p3 = scmp.ne.s32.totalorder %s15_s7, %s151_s15  ;;  %p157_p5 = scmp.lt.s32.totalorder %s151_s15, %s151_s15 }
   0xb   :  { %p158_p6 = por %p157_p5, %p156_p4 }
   0xd   :  { %p159_p7 = pnand %p158_p6, %p152_p3 }
   0xf   :  { %162 = shalt.err (!%p159_p7)
}
  0x10   :  { %17 = dma.hbm_to_vmem [thread:$0]  %s231_s0, 128, %s15_s7, [#allocation3]  }
  0x11   :  { %185 = dma.done.wait [#allocation3], 128  }
  0x12   :  { %186 = vsyncadd [#allocation3], 4294967168  ;;  %vm22_vm0 = vcmask 261120   ;;  %v21_v0 = vld [vmem:[#allocation2] sm:$0xff]  ;;  %v190_v7 = vmov 0.0   ;;  %vm191_vm1 = vmmov 0  }
  0x13   :  { %v23_v1 = vsel %vm22_vm0, %v21_v0, -inf  ;;  %128 = vmatprep.subr.mxu0 %v190_v7  ;;  %130 = vmatprep.mubr.msk.f32.mxu0 %vm191_vm1, %v190_v7  ;;  %s192_s0 = smov [#allocation5]   ;;  %vm107_vm2 = vcmask 64512  }
  0x14   :  { %24 = vmax.xlane.f32.xlu0 %v23_v1  ;;  %s115_s18 = sshll.u32 %s192_s0, 4  ;;  %s116_s18 = int_to_ptr.vmem [resolvable:$true] %s115_s18 }
  0x15   :  { %s163_s19 = scalar_lea.vmem %s116_s18, 128  ;;  %p168_p9 = scmp.lt.s32.totalorder %s116_s18, %s116_s18 }
  0x16   :  { %p164_p8 = scmp.ne.s32.totalorder %s116_s18, %s163_s19  ;;  %p169_p10 = scmp.lt.s32.totalorder %s163_s19, %s163_s19 }
  0x18   :  { %p170_p11 = por %p169_p10, %p168_p9 }
  0x1a   :  { %p171_p12 = pnand %p170_p11, %p164_p8 }
  0xa1   :  { %v25_v2 = vpop.xlane.xlu0 %24 }
  0xa2   :  { %v26_v3 = vsub.f32 %v21_v0, %v25_v2 }
  0xa4   :  { %v27_v4 = vmul.f32 1.442695, %v26_v3 }
  0xa6   :  { %137 = vpow2.f32 %v27_v4 }
  0xb0   :  { %v138_v5 = vpop.eup %137 }
  0xb1   :  { %v29_v6 = vsel %vm22_vm0, %v138_v5, 0.0 }
  0xb2   :  { %30 = vadd.xlane.f32.xlu0 %v29_v6 }
 0x13f   :  { %v31_v8 = vpop.xlane.xlu0 %30 }
 0x140   :  { %139 = vrcp.f32 %v31_v8 }
 0x14a   :  { %v140_v9 = vpop.eup %139 }
 0x14b   :  { %v33_v10 = vmul.f32 %v140_v9, %v138_v5 }
 0x14d   :  { %129 = vmatpush3.xpose.msk.msra.mxu0 %vm22_vm0, %v33_v10 }
 0x150   :  { %131 = vmatmul.mubr.msk.f32.vlgmr.msra.gmra.mrb[0].mxu0 %vm22_vm0, %v33_v10 }
 0x223   :  { %v103_v11 = vpop.f32.mrb[0].mxu0 }
 0x224   :  { %v132_v12 = vpop.f32.mrb[1].mxu0  ;;  %108 = vst.msk [vmem:[#allocation5] sm:$0xff] %vm107_vm2, %v103_v11 }
 0x225   :  { %174 = shalt.err (!%p171_p12)
}
 0x226   :  { %s175_s22 = scalar_lea.hbm %s232_s1, 128 }
 0x227   :  { %p176_p13 = scmp.ne.s32.totalorder %s232_s1, %s175_s22  ;;  %p179_p0 = scmp.lt.u32.totalorder %s175_s22, %s232_s1 }
 0x229   :  { %p181_p1 = pnand %p179_p0, %p176_p13 }
 0x22b   :  { %184 = shalt.err (!%p181_p1)
}
 0x22c   :  { %118 = dma.vmem_to_hbm [thread:$0]  %s116_s18, 128, %s232_s1, [#allocation4]  }
 0x22d   :  { %187 = dma.done.wait [#allocation4], 128  }
 0x22e   :  { %188 = vsyncadd [#allocation4], 4294967168 }
 0x22f   :  { %122 = vsyncpa [#allocation3], 1 }
 0x230   :  { %123 = vsyncpa [#allocation4], 1 }

</bundles_post_ra>
